<compile_context>
chip_gen: v5e
topology: v5e:2x2
jax: 0.10.0
libtpu: 0.0.40
codegen_flags: <defaults>
</compile_context>

<pallas_src>
import functools

import jax
import jax.numpy as jnp
from jax.experimental import pallas as pl
from jax.experimental.pallas import tpu as pltpu

_LANES = 128
_BLOCK_BYTES_TARGET = 1 << 20  # ~1 MiB of HBM bytes per input block


def _sublane_multiple(dtype) -> int:
    # Minimum sublane packing granularity: f32 -> 8, bf16/f16 -> 16, int8/fp8 -> 32.
    return {4: 8, 2: 16, 1: 32}.get(jnp.dtype(dtype).itemsize, 8)


def _partial_sq_diff_kernel(p_ref, t_ref, o_ref, *, rows, row_tile, mask_last):
    """Sum of squared differences of one (row_tile, 128) tile, folded to (8, 128)."""
    d = p_ref[...].astype(jnp.float32) - t_ref[...].astype(jnp.float32)
    sq = d * d
    if mask_last:
        # The last grid block may extend past `rows`; zero the overhang so the
        # unspecified block-padding never enters the sum.
        i = pl.program_id(0)
        local_row = jax.lax.broadcasted_iota(jnp.int32, (row_tile, _LANES), 0)
        sq = jnp.where(i * row_tile + local_row < rows, sq, 0.0)
    # VPU-only fold down to one vreg-shaped (8, 128) partial; the expensive
    # cross-lane reduce happens once, outside the kernel.
    o_ref[...] = jnp.sum(sq.reshape(row_tile // 8, 8, _LANES), axis=0)


def rmse_loss(preds: jax.Array, target: jax.Array) -> jax.Array:
    """Root-mean-square error over all elements (Pallas TPU kernel for the bulk)."""
    assert preds.shape == target.shape, "preds/target must have identical shapes"
    n_total = preds.size
    assert n_total > 0

    # Flatten only (free for contiguous arrays); keep the native dtype - the
    # f32 cast happens on-chip, halving HBM traffic for bf16/f16 inputs.
    p_flat = preds.reshape(-1)
    t_flat = target.reshape(-1)

    itemsize = jnp.dtype(preds.dtype).itemsize
    sub_mult = _sublane_multiple(preds.dtype)
    align = sub_mult * _LANES
    n_bulk = (n_total // align) * align

    total_sq = jnp.float32(0.0)

    if n_bulk > 0:
        rows = n_bulk // _LANES  # multiple of sub_mult (>= 8)

        # Dtype-aware row tile: constant HBM bytes per block, rounded down to
        # the sublane packing multiple, capped at the full row extent.
        target_rows = max(sub_mult,
                          (_BLOCK_BYTES_TARGET // (_LANES * itemsize)) // sub_mult * sub_mult)
        row_tile = min(target_rows, rows)
        n_tiles = pl.cdiv(rows, row_tile)
        mask_last = (rows % row_tile) != 0

        # No-op slices/reshapes when n_total is already (sublane*128)-aligned.
        p2d = p_flat[:n_bulk].reshape(rows, _LANES)
        t2d = t_flat[:n_bulk].reshape(rows, _LANES)

        cost = pl.CostEstimate(
            flops=3 * n_bulk,
            transcendentals=0,
            bytes_accessed=2 * n_bulk * itemsize + n_tiles * 8 * _LANES * 4,
        )

        partials = pl.pallas_call(
            functools.partial(
                _partial_sq_diff_kernel,
                rows=rows, row_tile=row_tile, mask_last=mask_last,
            ),
            out_shape=jax.ShapeDtypeStruct((n_tiles * 8, _LANES), jnp.float32),
            grid=(n_tiles,),
            in_specs=[
                pl.BlockSpec((row_tile, _LANES), lambda i: (i, 0)),
                pl.BlockSpec((row_tile, _LANES), lambda i: (i, 0)),
            ],
            out_specs=pl.BlockSpec((8, _LANES), lambda i: (i, 0)),
            compiler_params=pltpu.CompilerParams(
                dimension_semantics=("parallel",),  # independent blocks -> 2 TCs on v7x
            ),
            cost_estimate=cost,
        )(p2d, t2d)

        total_sq = total_sq + jnp.sum(partials, dtype=jnp.float32)

    if n_bulk < n_total:
        # Tiny unaligned tail (< sublane*128 elements): plain JAX, no full pad.
        dp = (p_flat[n_bulk:].astype(jnp.float32)
              - t_flat[n_bulk:].astype(jnp.float32))
        total_sq = total_sq + jnp.sum(dp * dp)

    return jnp.sqrt(total_sq / jnp.float32(n_total))


if __name__ == "__main__":
    key = jax.random.PRNGKey(0)
    k1, k2 = jax.random.split(key)

    # Small logits-style regression output, as in the original module's usage.
    preds = jax.random.normal(k1, (2, 4, 16, 16), dtype=jnp.float32)
    target = jax.random.normal(k2, (2, 4, 16, 16), dtype=jnp.float32)

    loss = jax.jit(rmse_loss)(preds, target)
    jax.block_until_ready(loss)
    ref = jnp.sqrt(jnp.mean((preds - target) ** 2))
    assert jnp.allclose(loss, ref, rtol=1e-4, atol=1e-6), (loss, ref)

    # Unaligned element count: exercises bulk-kernel + plain-JAX tail path.
    k3, k4 = jax.random.split(k1)
    p2 = jax.random.normal(k3, (3, 5, 17, 13), dtype=jnp.float32)
    t2 = jax.random.normal(k4, (3, 5, 17, 13), dtype=jnp.float32)
    loss2 = jax.jit(rmse_loss)(p2, t2)
    jax.block_until_ready(loss2)
    ref2 = jnp.sqrt(jnp.mean((p2 - t2) ** 2))
    assert jnp.allclose(loss2, ref2, rtol=1e-4, atol=1e-6), (loss2, ref2)

    # bf16 input whose row count is not a multiple of the row tile: exercises
    # native-dtype passthrough + dtype-aware tiling (+ masking when needed).
    k5, k6 = jax.random.split(k2)
    p3 = jax.random.normal(k5, (2, 4, 260, 128), dtype=jnp.bfloat16)
    t3 = jax.random.normal(k6, (2, 4, 260, 128), dtype=jnp.bfloat16)
    loss3 = jax.jit(rmse_loss)(p3, t3)
    jax.block_until_ready(loss3)
    ref3 = jnp.sqrt(jnp.mean(
        (p3.astype(jnp.float32) - t3.astype(jnp.float32)) ** 2))
    assert jnp.allclose(loss3, ref3, rtol=1e-4, atol=1e-6), (loss3, ref3)

    # Larger f32 case that forces multiple grid steps + last-block masking.
    k7, k8 = jax.random.split(k3)
    p4 = jax.random.normal(k7, (5000, 128), dtype=jnp.float32)
    t4 = jax.random.normal(k8, (5000, 128), dtype=jnp.float32)
    loss4 = jax.jit(rmse_loss)(p4, t4)
    jax.block_until_ready(loss4)
    ref4 = jnp.sqrt(jnp.mean((p4 - t4) ** 2))
    assert jnp.allclose(loss4, ref4, rtol=1e-4, atol=1e-6), (loss4, ref4)

    print("KERNEL_OK")
</pallas_src>

<mosaic_0001>
module attributes {stable_mosaic.version = 11 : i64} {
  func.func @_partial_sq_diff_kernel(%arg0: i32, %arg1: memref<16x128xf32, #tpu.memory_space<vmem>>, %arg2: memref<16x128xf32, #tpu.memory_space<vmem>>, %arg3: memref<8x128xf32, #tpu.memory_space<vmem>>) attributes {dimension_semantics = [#tpu.dimension_semantics<parallel>], iteration_bounds = array<i64: 1>, scalar_prefetch = 0 : i64, scratch_operands = 0 : i64, tpu.core_type = #tpu.core_type<tc>, window_params = [{transform_indices = @transform_0, window_bounds = array<i64: 16, 128>}, {transform_indices = @transform_1, window_bounds = array<i64: 16, 128>}, {transform_indices = @transform_2, window_bounds = array<i64: 8, 128>}]} {
    %c0 = arith.constant 0 : index
    %c0_0 = arith.constant 0 : index
    %0 = vector.load %arg1[%c0, %c0_0] : memref<16x128xf32, #tpu.memory_space<vmem>>, vector<16x128xf32>
    %c0_1 = arith.constant 0 : index
    %c0_2 = arith.constant 0 : index
    %1 = vector.load %arg2[%c0_1, %c0_2] : memref<16x128xf32, #tpu.memory_space<vmem>>, vector<16x128xf32>
    %2 = arith.subf %0, %1 : vector<16x128xf32>
    %3 = arith.mulf %2, %2 : vector<16x128xf32>
    %4 = vector.shape_cast %3 : vector<16x128xf32> to vector<2x8x128xf32>
    %cst = arith.constant dense<0.000000e+00> : vector<8x128xf32>
    %5 = vector.multi_reduction <add>, %4, %cst [0] : vector<2x8x128xf32> to vector<8x128xf32>
    %c0_3 = arith.constant 0 : index
    %c0_4 = arith.constant 0 : index
    %6 = vector.load %arg3[%c0_3, %c0_4] : memref<8x128xf32, #tpu.memory_space<vmem>>, vector<8x128xf32>
    tpu.vector_store %arg3[%c0_3, %c0_4], %5 {strides = array<i32>} : memref<8x128xf32, #tpu.memory_space<vmem>>, vector<8x128xf32>,
    return
  }
  func.func @transform_0(%arg0: i32) -> (i32, i32) {
    %c0_i32 = arith.constant 0 : i32
    %c0_i32_0 = arith.constant 0 : i32
    return %arg0, %c0_i32 : i32, i32
  }
  func.func @transform_1(%arg0: i32) -> (i32, i32) {
    %c0_i32 = arith.constant 0 : i32
    %c0_i32_0 = arith.constant 0 : i32
    return %arg0, %c0_i32 : i32, i32
  }
  func.func @transform_2(%arg0: i32) -> (i32, i32) {
    %c0_i32 = arith.constant 0 : i32
    %c0_i32_0 = arith.constant 0 : i32
    return %arg0, %c0_i32 : i32, i32
  }
}

</mosaic_0001>

<bundles_post_ra>
// kernel: rmse_loss.1
= control target key start
LH: loop header
LB: loop body
LE: loop exit
PB: predicated region body
PF: predicated region fallthrough
CT: control target
= control target key end

     0   :  { %s55_s0 = inlined_call_operand.vmem [shape: f32[16,128], index: 0, kind: input, shape index: {}]   ;;  %s56_s1 = inlined_call_operand.vmem [shape: f32[16,128], index: 1, kind: input, shape index: {}]   ;;  %s57_s2 = inlined_call_operand.vmem [shape: f32[8,128], index: 2, kind: output, shape index: {}]  }
   0x1   :  { %v11_v0 = vld [vmem:[%s55_s0] sm:$0xff]  ;;  %v12_v1 = vld [vmem:[%s55_s0 + $0x8] sm:$0xff] }
   0x2   :  { %v13_v2 = vld [vmem:[%s56_s1] sm:$0xff]  ;;  %v14_v3 = vld [vmem:[%s56_s1 + $0x8] sm:$0xff] }
   0x3   :  { %v15_v4 = vsub.f32 %v11_v0, %v13_v2  ;;  %v16_v5 = vsub.f32 %v12_v1, %v14_v3 }
   0x5   :  { %v17_v6 = vmul.f32 %v15_v4, %v15_v4  ;;  %v18_v7 = vmul.f32 %v16_v5, %v16_v5 }
   0x7   :  { %v19_v8 = vadd.f32 %v18_v7, %v17_v6 }
   0x9   :  { %20 = vst [vmem:[%s57_s2] sm:$0xff] %v19_v8 }

</bundles_post_ra>
